<compile_context>
chip_gen: v5e
topology: v5e:2x2
jax: 0.10.0
libtpu: 0.0.40
codegen_flags: <defaults>
</compile_context>

<pallas_src>
import functools

import jax
import jax.numpy as jnp
from jax import lax
from jax.experimental import pallas as pl
from jax.experimental.pallas import tpu as pltpu


def _potr_loss_kernel(*refs, num_layers):
    pred_refs = refs[:num_layers]
    (gt_ref, w_ref, logits_ref, cls_ref, u_ref, out_ref, acc_ref) = refs[num_layers:]

    p = pl.program_id(0)
    c = pl.program_id(1)
    last_c = pl.num_programs(1) - 1

    @pl.when(c == 0)
    def _init():
        acc_ref[...] = jnp.zeros_like(acc_ref)

    # ---- weighted L1 pose partial sum for this row chunk, fused over all L layers ----
    gt = gt_ref[...].astype(jnp.float32)                       # (r_tile, C)
    diff_sum = jnp.zeros_like(gt)
    for pr in pred_refs:                                       # static unroll over layers
        diff_sum = diff_sum + jnp.abs(pr[...].astype(jnp.float32) - gt)
    # W is layer-invariant: factor it out of the per-layer sum (W==0 on padded elements).
    acc_ref[...] += jnp.sum(w_ref[...].astype(jnp.float32) * diff_sum)

    # ---- finalize: fold in the (tiny) cross-entropy and uncertainty terms once ----
    @pl.when(c == last_c)
    def _finalize():
        logits = logits_ref[...].astype(jnp.float32)           # (L*B, A)
        m = jnp.max(logits, axis=-1, keepdims=True)
        lse = m + jnp.log(jnp.sum(jnp.exp(logits - m), axis=-1, keepdims=True))
        lane = lax.broadcasted_iota(jnp.int32, logits.shape, 1)
        gt_logit = jnp.sum(jnp.where(lane == cls_ref[...], logits, 0.0),
                           axis=-1, keepdims=True)
        ce_sum = jnp.sum(lse - gt_logit)
        unc_sum = jnp.sum(jnp.log(u_ref[...].astype(jnp.float32)))

        gate = (p == 0).astype(jnp.float32)   # count CE/unc once across parallel slices
        lane4 = lax.broadcasted_iota(jnp.int32, out_ref.shape, 2)
        out_ref[...] = (jnp.where(lane4 == 0, acc_ref[...], 0.0)
                        + jnp.where(lane4 == 1, gate * ce_sum, 0.0)
                        + jnp.where(lane4 == 2, gate * unc_sum, 0.0))


def potr_loss(decoder_pred, decoder_gt, class_logits, class_gt, uncertainty_matrix,
              activity_weight=0.5, uncertainty_weight=0.1):
    """JAX/Pallas equivalent of POTRLoss.forward (ua_loss + loss combination)."""
    L = len(decoder_pred)
    B, T, J, D = decoder_gt.shape
    A = uncertainty_matrix.shape[0]
    N = B * T * J * D
    LB = L * B
    f32 = jnp.float32

    # ---- chunked, lane/sublane-dense layout for the pose tensors ----
    C = 512                               # lanes per row (multiple of 128)
    ROWS_PER_CHUNK = 256                  # -> 0.5 MiB f32 per buffered block per tensor
    Rtot = -(-N // C)
    r_tile = min(ROWS_PER_CHUNK, -(-Rtot // 8) * 8)
    total_chunks = -(-Rtot // r_tile)
    P = 2 if total_chunks >= 2 else 1     # parallel slices (uses both v7x TensorCores)
    n_chunks = -(-total_chunks // P)
    Rpad = P * n_chunks * r_tile
    Npad = Rpad * C

    def flat2d(x):
        x = x.reshape(-1)
        if Npad > N:
            x = jnp.pad(x, (0, Npad - N))       # zero pad; W is zero there too
        return x.reshape(Rpad, C)

    preds2d = [flat2d(pr) for pr in decoder_pred]          # native dtype, no stack
    gt2d = flat2d(decoder_gt)

    # layer-invariant uncertainty weight W[b,t,j,d] = 1 - (t/T)**U[class[b], j]
    unc_vec = uncertainty_matrix.astype(f32)[class_gt].reshape(B, 1, J, 1)
    u_coeff = (jnp.arange(1, T + 1, dtype=f32) / T).reshape(1, T, 1, 1)
    w_full = jnp.broadcast_to(1.0 - u_coeff ** unc_vec, (B, T, J, D))
    w2d = flat2d(w_full.astype(decoder_gt.dtype))

    logits = jnp.stack(class_logits).reshape(LB, A)        # tiny; keep native dtype
    cls = jnp.tile(class_gt.astype(jnp.int32), (L,)).reshape(LB, 1)

    kernel = functools.partial(_potr_loss_kernel, num_layers=L)

    row_map = lambda p, c: (p * n_chunks + c, 0)
    pose_spec = pl.BlockSpec((r_tile, C), row_map)
    whole = lambda p, c: (0, 0)

    grid_spec = pltpu.PrefetchScalarGridSpec(
        num_scalar_prefetch=0,
        grid=(P, n_chunks),
        in_specs=(
            [pose_spec] * L                                 # decoder_pred layers
            + [pose_spec,                                   # gt
               pose_spec,                                   # precomputed weight W
               pl.BlockSpec((LB, A), whole),                # class logits (all layers)
               pl.BlockSpec((LB, 1), whole),                # class_gt per (layer,batch) row
               pl.BlockSpec((A, J), whole)]                 # uncertainty matrix
        ),
        out_specs=pl.BlockSpec((1, 8, 4), lambda p, c: (p, 0, 0)),
        scratch_shapes=[pltpu.VMEM((1, 1), jnp.float32)],   # running pose partial sum
    )

    itemsize = jnp.dtype(decoder_gt.dtype).itemsize
    cost = pl.CostEstimate(
        flops=int((3 * L + 2) * Npad + 10 * LB * A),
        transcendentals=int(LB * A + LB + A * J),
        bytes_accessed=int((L + 2) * Npad * itemsize + LB * (A + 1) * 4
                           + A * J * 4 + P * 8 * 4 * 4),
    )

    partials = pl.pallas_call(
        kernel,
        out_shape=jax.ShapeDtypeStruct((P, 8, 4), jnp.float32),
        grid_spec=grid_spec,
        compiler_params=pltpu.CompilerParams(
            dimension_semantics=("parallel", "arbitrary")),
        cost_estimate=cost,
    )(*preds2d, gt2d, w2d, logits, cls, uncertainty_matrix)

    sums = jnp.sum(partials[:, 0, :], axis=0)               # (4,) over parallel slices
    pose_loss = sums[0] / (L * N)
    activity_loss = sums[1] / (L * B)
    uncertainty_loss = sums[2] / (A * J)
    loss = pose_loss + activity_weight * activity_loss - uncertainty_weight * uncertainty_loss

    return {
        "loss": loss,
        "pose_loss": pose_loss,
        "activity_loss": activity_loss,
        "uncertainty_loss": uncertainty_loss,
    }


if __name__ == "__main__":
    # small synthetic shapes consistent with the module
    B, T, J, D = 2, 8, 4, 3          # batch, future timesteps, major joints, coords/joint
    A, L = 5, 2                      # num_activities, decoder layers
    activity_weight, uncertainty_weight = 0.5, 0.1

    key = jax.random.PRNGKey(0)
    k_gt, k_pred, k_log, k_cls, k_unc = jax.random.split(key, 5)

    decoder_gt = jax.random.normal(k_gt, (B, T, J, D), dtype=jnp.float32)
    decoder_pred = [jax.random.normal(jax.random.fold_in(k_pred, i), (B, T, J, D),
                                      dtype=jnp.float32) for i in range(L)]
    class_logits = [jax.random.normal(jax.random.fold_in(k_log, i), (B, A),
                                      dtype=jnp.float32) for i in range(L)]
    class_gt = jax.random.randint(k_cls, (B,), 0, A)
    # deterministic positive "uncertainty matrix" parameter (synthetic init, no checkpoint)
    uncertainty_matrix = (jax.nn.sigmoid(jax.random.normal(k_unc, (A, J), dtype=jnp.float32))
                          * 0.9 + 0.05)

    out = potr_loss(decoder_pred, decoder_gt, class_logits, class_gt,
                    uncertainty_matrix, activity_weight, uncertainty_weight)
    jax.block_until_ready(out)

    # ---------------- pure-JAX reference (mirrors POTRLoss.ua_loss / forward) ----------------
    unc_vec = uncertainty_matrix[class_gt].reshape(B, 1, J, 1)
    u_coeff = (jnp.arange(1, T + 1, dtype=jnp.float32) / T).reshape(1, T, 1, 1)
    wgt = 1.0 - u_coeff ** unc_vec
    pose_ref = sum(jnp.mean(wgt * jnp.abs(p - decoder_gt)) for p in decoder_pred) / L

    def _ce(lg):
        lse = jax.nn.logsumexp(lg, axis=-1)
        return jnp.mean(lse - lg[jnp.arange(B), class_gt])

    act_ref = sum(_ce(lg) for lg in class_logits) / L
    unc_ref = jnp.mean(jnp.log(uncertainty_matrix))
    loss_ref = pose_ref + activity_weight * act_ref - uncertainty_weight * unc_ref

    assert jnp.allclose(out["pose_loss"], pose_ref, atol=1e-5, rtol=1e-5)
    assert jnp.allclose(out["activity_loss"], act_ref, atol=1e-5, rtol=1e-5)
    assert jnp.allclose(out["uncertainty_loss"], unc_ref, atol=1e-5, rtol=1e-5)
    assert jnp.allclose(out["loss"], loss_ref, atol=1e-5, rtol=1e-5)

    print("KERNEL_OK")
</pallas_src>

<mosaic_0001>
module attributes {stable_mosaic.version = 11 : i64} {
  func.func @_potr_loss_kernel(%arg0: i32, %arg1: i32, %arg2: memref<8x512xf32, #tpu.memory_space<vmem>>, %arg3: memref<8x512xf32, #tpu.memory_space<vmem>>, %arg4: memref<8x512xf32, #tpu.memory_space<vmem>>, %arg5: memref<8x512xf32, #tpu.memory_space<vmem>>, %arg6: memref<4x5xf32, #tpu.memory_space<vmem>>, %arg7: memref<4x1xi32, #tpu.memory_space<vmem>>, %arg8: memref<5x4xf32, #tpu.memory_space<vmem>>, %arg9: memref<1x8x4xf32, #tpu.memory_space<vmem>>, %arg10: memref<1x1xf32, #tpu.memory_space<vmem>>) attributes {dimension_semantics = [#tpu.dimension_semantics<parallel>, #tpu.dimension_semantics<arbitrary>], iteration_bounds = array<i64: 1, 1>, scalar_prefetch = 0 : i64, scratch_operands = 1 : i64, tpu.core_type = #tpu.core_type<tc>, window_params = [{transform_indices = @transform_0, window_bounds = array<i64: 8, 512>}, {transform_indices = @transform_1, window_bounds = array<i64: 8, 512>}, {transform_indices = @transform_2, window_bounds = array<i64: 8, 512>}, {transform_indices = @transform_3, window_bounds = array<i64: 8, 512>}, {pipeline_mode = #tpu.pipeline_mode<synchronous>, transform_indices = @transform_4, window_bounds = array<i64: 4, 5>}, {pipeline_mode = #tpu.pipeline_mode<synchronous>, transform_indices = @transform_5, window_bounds = array<i64: 4, 1>}, {pipeline_mode = #tpu.pipeline_mode<synchronous>, transform_indices = @transform_6, window_bounds = array<i64: 5, 4>}, {transform_indices = @transform_7, window_bounds = array<i64: 1, 8, 4>}]} {
    %c0_i32 = arith.constant 0 : i32
    %0 = arith.cmpi eq, %arg1, %c0_i32 : i32
    %1 = arith.extui %0 : i1 to i32
    %c0_i32_0 = arith.constant 0 : i32
    %2 = arith.cmpi ne, %1, %c0_i32_0 : i32
    scf.if %2 {
      %cst_15 = arith.constant 0.000000e+00 : f32
      %26 = vector.broadcast %cst_15 : f32 to vector<1x1xf32>
      %c0_16 = arith.constant 0 : index
      %c0_17 = arith.constant 0 : index
      %27 = vector.load %arg10[%c0_16, %c0_17] : memref<1x1xf32, #tpu.memory_space<vmem>>, vector<1x1xf32>
      tpu.vector_store %arg10[%c0_16, %c0_17], %26 {strides = array<i32>} : memref<1x1xf32, #tpu.memory_space<vmem>>, vector<1x1xf32>,
    } else {
    }
    %c0 = arith.constant 0 : index
    %c0_1 = arith.constant 0 : index
    %3 = vector.load %arg4[%c0, %c0_1] : memref<8x512xf32, #tpu.memory_space<vmem>>, vector<8x512xf32>
    %cst = arith.constant 0.000000e+00 : f32
    %4 = vector.broadcast %cst : f32 to vector<8x512xf32>
    %c0_2 = arith.constant 0 : index
    %c0_3 = arith.constant 0 : index
    %5 = vector.load %arg2[%c0_2, %c0_3] : memref<8x512xf32, #tpu.memory_space<vmem>>, vector<8x512xf32>
    %6 = arith.subf %5, %3 : vector<8x512xf32>
    %7 = math.absf %6 : vector<8x512xf32>
    %8 = arith.addf %4, %7 : vector<8x512xf32>
    %c0_4 = arith.constant 0 : index
    %c0_5 = arith.constant 0 : index
    %9 = vector.load %arg3[%c0_4, %c0_5] : memref<8x512xf32, #tpu.memory_space<vmem>>, vector<8x512xf32>
    %10 = arith.subf %9, %3 : vector<8x512xf32>
    %11 = math.absf %10 : vector<8x512xf32>
    %12 = arith.addf %8, %11 : vector<8x512xf32>
    %c0_6 = arith.constant 0 : index
    %c0_7 = arith.constant 0 : index
    %13 = vector.load %arg10[%c0_6, %c0_7] : memref<1x1xf32, #tpu.memory_space<vmem>>, vector<1x1xf32>
    %c0_8 = arith.constant 0 : index
    %c0_9 = arith.constant 0 : index
    %14 = vector.load %arg5[%c0_8, %c0_9] : memref<8x512xf32, #tpu.memory_space<vmem>>, vector<8x512xf32>
    %15 = arith.mulf %14, %12 : vector<8x512xf32>
    %16 = vector.shape_cast %15 : vector<8x512xf32> to vector<1x8x512xf32>
    %cst_10 = arith.constant dense<0.000000e+00> : vector<1xf32>
    %17 = vector.multi_reduction <add>, %16, %cst_10 [1, 2] : vector<1x8x512xf32> to vector<1xf32>
    %18 = vector.shape_cast %17 : vector<1xf32> to vector<1x1x1xf32>
    %19 = vector.extract %18[0, 0, 0] : f32 from vector<1x1x1xf32>
    %20 = vector.broadcast %19 : f32 to vector<1x1xf32>
    %21 = arith.addf %13, %20 : vector<1x1xf32>
    %c0_11 = arith.constant 0 : index
    %c0_12 = arith.constant 0 : index
    %22 = vector.load %arg10[%c0_11, %c0_12] : memref<1x1xf32, #tpu.memory_space<vmem>>, vector<1x1xf32>
    tpu.vector_store %arg10[%c0_11, %c0_12], %21 {strides = array<i32>} : memref<1x1xf32, #tpu.memory_space<vmem>>, vector<1x1xf32>,
    %c0_i32_13 = arith.constant 0 : i32
    %23 = arith.cmpi eq, %arg1, %c0_i32_13 : i32
    %24 = arith.extui %23 : i1 to i32
    %c0_i32_14 = arith.constant 0 : i32
    %25 = arith.cmpi ne, %24, %c0_i32_14 : i32
    scf.if %25 {
      %c0_15 = arith.constant 0 : index
      %c0_16 = arith.constant 0 : index
      %26 = vector.load %arg6[%c0_15, %c0_16] : memref<4x5xf32, #tpu.memory_space<vmem>>, vector<4x5xf32>
      %cst_17 = arith.constant dense<0xFF800000> : vector<4xf32>
      %27 = vector.multi_reduction <maximumf>, %26, %cst_17 [1] : vector<4x5xf32> to vector<4xf32>
      %28 = vector.shape_cast %27 : vector<4xf32> to vector<4x1xf32>
      %29 = vector.broadcast %28 : vector<4x1xf32> to vector<4x5xf32>
      %30 = arith.subf %26, %29 : vector<4x5xf32>
      %31 = math.exp %30 : vector<4x5xf32>
      %cst_18 = arith.constant dense<0.000000e+00> : vector<4xf32>
      %32 = vector.multi_reduction <add>, %31, %cst_18 [1] : vector<4x5xf32> to vector<4xf32>
      %33 = vector.shape_cast %32 : vector<4xf32> to vector<4x1xf32>
      %34 = math.log %33 : vector<4x1xf32>
      %35 = arith.addf %28, %34 : vector<4x1xf32>
      %36 = tpu.iota {dimensions = array<i32: 1>} : vector<4x5xi32>
      %c0_19 = arith.constant 0 : index
      %c0_20 = arith.constant 0 : index
      %37 = vector.load %arg7[%c0_19, %c0_20] : memref<4x1xi32, #tpu.memory_space<vmem>>, vector<4x1xi32>
      %38 = vector.broadcast %37 : vector<4x1xi32> to vector<4x5xi32>
      %39 = arith.cmpi eq, %36, %38 : vector<4x5xi32>
      %cst_21 = arith.constant 0.000000e+00 : f32
      %40 = vector.broadcast %cst_21 : f32 to vector<4x5xf32>
      %41 = arith.select %39, %26, %40 : vector<4x5xi1>, vector<4x5xf32>
      %cst_22 = arith.constant dense<0.000000e+00> : vector<4xf32>
      %42 = vector.multi_reduction <add>, %41, %cst_22 [1] : vector<4x5xf32> to vector<4xf32>
      %43 = vector.shape_cast %42 : vector<4xf32> to vector<4x1xf32>
      %44 = arith.subf %35, %43 : vector<4x1xf32>
      %45 = vector.shape_cast %44 : vector<4x1xf32> to vector<1x4x1xf32>
      %cst_23 = arith.constant dense<0.000000e+00> : vector<1xf32>
      %46 = vector.multi_reduction <add>, %45, %cst_23 [1, 2] : vector<1x4x1xf32> to vector<1xf32>
      %47 = vector.shape_cast %46 : vector<1xf32> to vector<1x1x1xf32>
      %48 = vector.extract %47[0, 0, 0] : f32 from vector<1x1x1xf32>
      %c0_24 = arith.constant 0 : index
      %c0_25 = arith.constant 0 : index
      %49 = vector.load %arg8[%c0_24, %c0_25] : memref<5x4xf32, #tpu.memory_space<vmem>>, vector<5x4xf32>
      %50 = math.log %49 : vector<5x4xf32>
      %51 = vector.shape_cast %50 : vector<5x4xf32> to vector<1x5x4xf32>
      %cst_26 = arith.constant dense<0.000000e+00> : vector<1xf32>
      %52 = vector.multi_reduction <add>, %51, %cst_26 [1, 2] : vector<1x5x4xf32> to vector<1xf32>
      %53 = vector.shape_cast %52 : vector<1xf32> to vector<1x1x1xf32>
      %54 = vector.extract %53[0, 0, 0] : f32 from vector<1x1x1xf32>
      %c0_i32_27 = arith.constant 0 : i32
      %55 = arith.cmpi eq, %arg0, %c0_i32_27 : i32
      %56 = arith.extui %55 : i1 to i32
      %57 = arith.sitofp %56 : i32 to f32
      %58 = tpu.iota {dimensions = array<i32: 2>} : vector<1x8x4xi32>
      %c0_i32_28 = arith.constant 0 : i32
      %59 = vector.broadcast %c0_i32_28 : i32 to vector<1x8x4xi32>
      %60 = arith.cmpi eq, %58, %59 : vector<1x8x4xi32>
      %c0_29 = arith.constant 0 : index
      %c0_30 = arith.constant 0 : index
      %61 = vector.load %arg10[%c0_29, %c0_30] : memref<1x1xf32, #tpu.memory_space<vmem>>, vector<1x1xf32>
      %cst_31 = arith.constant 0.000000e+00 : f32
      %62 = vector.shape_cast %61 : vector<1x1xf32> to vector<1x1x1xf32>
      %63 = vector.broadcast %62 : vector<1x1x1xf32> to vector<1x8x4xf32>
      %64 = vector.broadcast %cst_31 : f32 to vector<1x8x4xf32>
      %65 = arith.select %60, %63, %64 : vector<1x8x4xi1>, vector<1x8x4xf32>
      %c1_i32 = arith.constant 1 : i32
      %66 = vector.broadcast %c1_i32 : i32 to vector<1x8x4xi32>
      %67 = arith.cmpi eq, %58, %66 : vector<1x8x4xi32>
      %68 = arith.mulf %57, %48 : f32
      %cst_32 = arith.constant 0.000000e+00 : f32
      %69 = vector.broadcast %68 : f32 to vector<1x8x4xf32>
      %70 = vector.broadcast %cst_32 : f32 to vector<1x8x4xf32>
      %71 = arith.select %67, %69, %70 : vector<1x8x4xi1>, vector<1x8x4xf32>
      %72 = arith.addf %65, %71 : vector<1x8x4xf32>
      %c2_i32 = arith.constant 2 : i32
      %73 = vector.broadcast %c2_i32 : i32 to vector<1x8x4xi32>
      %74 = arith.cmpi eq, %58, %73 : vector<1x8x4xi32>
      %75 = arith.mulf %57, %54 : f32
      %cst_33 = arith.constant 0.000000e+00 : f32
      %76 = vector.broadcast %75 : f32 to vector<1x8x4xf32>
      %77 = vector.broadcast %cst_33 : f32 to vector<1x8x4xf32>
      %78 = arith.select %74, %76, %77 : vector<1x8x4xi1>, vector<1x8x4xf32>
      %79 = arith.addf %72, %78 : vector<1x8x4xf32>
      %c0_34 = arith.constant 0 : index
      %c0_35 = arith.constant 0 : index
      %c0_36 = arith.constant 0 : index
      %80 = vector.load %arg9[%c0_34, %c0_35, %c0_36] : memref<1x8x4xf32, #tpu.memory_space<vmem>>, vector<1x8x4xf32>
      tpu.vector_store %arg9[%c0_34, %c0_35, %c0_36], %79 {strides = array<i32>} : memref<1x8x4xf32, #tpu.memory_space<vmem>>, vector<1x8x4xf32>,
    } else {
    }
    return
  }
  func.func @transform_0(%arg0: i32, %arg1: i32) -> (i32, i32) {
    %c1_i32 = arith.constant 1 : i32
    %0 = arith.muli %arg0, %c1_i32 : i32
    %1 = arith.addi %0, %arg1 : i32
    %c0_i32 = arith.constant 0 : i32
    %c0_i32_0 = arith.constant 0 : i32
    return %1, %c0_i32 : i32, i32
  }
  func.func @transform_1(%arg0: i32, %arg1: i32) -> (i32, i32) {
    %c1_i32 = arith.constant 1 : i32
    %0 = arith.muli %arg0, %c1_i32 : i32
    %1 = arith.addi %0, %arg1 : i32
    %c0_i32 = arith.constant 0 : i32
    %c0_i32_0 = arith.constant 0 : i32
    return %1, %c0_i32 : i32, i32
  }
  func.func @transform_2(%arg0: i32, %arg1: i32) -> (i32, i32) {
    %c1_i32 = arith.constant 1 : i32
    %0 = arith.muli %arg0, %c1_i32 : i32
    %1 = arith.addi %0, %arg1 : i32
    %c0_i32 = arith.constant 0 : i32
    %c0_i32_0 = arith.constant 0 : i32
    return %1, %c0_i32 : i32, i32
  }
  func.func @transform_3(%arg0: i32, %arg1: i32) -> (i32, i32) {
    %c1_i32 = arith.constant 1 : i32
    %0 = arith.muli %arg0, %c1_i32 : i32
    %1 = arith.addi %0, %arg1 : i32
    %c0_i32 = arith.constant 0 : i32
    %c0_i32_0 = arith.constant 0 : i32
    return %1, %c0_i32 : i32, i32
  }
  func.func @transform_4(%arg0: i32, %arg1: i32) -> (i32, i32) {
    %c0_i32 = arith.constant 0 : i32
    %c0_i32_0 = arith.constant 0 : i32
    %c0_i32_1 = arith.constant 0 : i32
    return %c0_i32, %c0_i32_0 : i32, i32
  }
  func.func @transform_5(%arg0: i32, %arg1: i32) -> (i32, i32) {
    %c0_i32 = arith.constant 0 : i32
    %c0_i32_0 = arith.constant 0 : i32
    %c0_i32_1 = arith.constant 0 : i32
    return %c0_i32, %c0_i32_0 : i32, i32
  }
  func.func @transform_6(%arg0: i32, %arg1: i32) -> (i32, i32) {
    %c0_i32 = arith.constant 0 : i32
    %c0_i32_0 = arith.constant 0 : i32
    %c0_i32_1 = arith.constant 0 : i32
    return %c0_i32, %c0_i32_0 : i32, i32
  }
  func.func @transform_7(%arg0: i32, %arg1: i32) -> (i32, i32, i32) {
    %c0_i32 = arith.constant 0 : i32
    %c0_i32_0 = arith.constant 0 : i32
    %c0_i32_1 = arith.constant 0 : i32
    return %arg0, %c0_i32, %c0_i32_0 : i32, i32, i32
  }
}

</mosaic_0001>

<bundles_post_ra>
// kernel: tpu_custom_call.1
= control target key start
LH: loop header
LB: loop body
LE: loop exit
PB: predicated region body
PF: predicated region fallthrough
CT: control target
= control target key end

     0   :  { %12 = vsyncpa [#allocation4], 0  ;;  %s457_s0 = inlined_call_operand.hbm [shape: f32[8,512], index: 0, kind: input, shape index: {}]   ;;  %s458_s1 = inlined_call_operand.hbm [shape: f32[8,512], index: 1, kind: input, shape index: {}]   ;;  %s459_s2 = inlined_call_operand.hbm [shape: f32[8,512], index: 2, kind: input, shape index: {}]   ;;  %s460_s3 = inlined_call_operand.hbm [shape: f32[8,512], index: 3, kind: input, shape index: {}]   ;;  %s461_s4 = inlined_call_operand.vmem [shape: f32[4,5], index: 4, kind: input, shape index: {}]   ;;  %s462_s5 = inlined_call_operand.vmem [shape: s32[4,1], index: 5, kind: input, shape index: {}]   ;;  %s463_s6 = inlined_call_operand.vmem [shape: f32[5,4], index: 6, kind: input, shape index: {}]   ;;  %s464_s7 = inlined_call_operand.vmem [shape: f32[1,8,4], index: 7, kind: output, shape index: {}]  }
   0x1   :  { %13 = vsyncpa [#allocation6], 0  ;;  %s39_s26 = sshll.u32 %s458_s1, 4  ;;  %s40_s26 = int_to_ptr.hbm [resolvable:$true] %s39_s26 }
   0x2   :  { %14 = vsyncpa [#allocation9], 0  ;;  %s376_s27 = smov [#allocation5]   ;;  %s24_s8 = sshll.u32 %s457_s0, 4  ;;  %s25_s8 = int_to_ptr.hbm [resolvable:$true] %s24_s8 }
   0x3   :  { %s41_s28 = sshll.u32 %s376_s27, 4  ;;  %s377_s9 = smov [#allocation3]   ;;  %s42_s28 = int_to_ptr.vmem [resolvable:$true] %s41_s28 }
   0x4   :  { %44 = dma.hbm_to_vmem [thread:$0]  %s40_s26, 512, %s42_s28, [#allocation6]  }
   0x5   :  { %s26_s10 = sshll.u32 %s377_s9, 4  ;;  %s54_s13 = sshll.u32 %s459_s2, 4  ;;  %s27_s10 = int_to_ptr.vmem [resolvable:$true] %s26_s10  ;;  %s55_s13 = int_to_ptr.hbm [resolvable:$true] %s54_s13 }
   0x6   :  { %29 = dma.hbm_to_vmem [thread:$0]  %s25_s8, 512, %s27_s10, [#allocation4]  }
   0x7   :  { %s69_s15 = sshll.u32 %s460_s3, 4  ;;  %s378_s16 = smov [#allocation7]   ;;  %s70_s15 = int_to_ptr.hbm [resolvable:$true] %s69_s15 }
   0x8   :  { %s56_s17 = sshll.u32 %s378_s16, 4  ;;  %s379_s0 = smov [#allocation8]   ;;  %s57_s17 = int_to_ptr.vmem [resolvable:$true] %s56_s17 }
   0x9   :  { %59 = dma.hbm_to_vmem [thread:$0]  %s55_s13, 512, %s57_s17, [#allocation6]  }
   0xa   :  { %s71_s18 = sshll.u32 %s379_s0, 4  ;;  %s72_s18 = int_to_ptr.vmem [resolvable:$true] %s71_s18 }
   0xb   :  { %74 = dma.hbm_to_vmem [thread:$0]  %s70_s15, 512, %s72_s18, [#allocation9]  }
   0xc   :  { %370 = dma.done.wait [#allocation4], 512  }
   0xd   :  { %371 = vsyncadd [#allocation4], 4294966784 }
   0xe   :  { %372 = dma.done.wait [#allocation6], 1024  }
   0xf   :  { %373 = vsyncadd [#allocation6], 4294966272 }
  0x10   :  { %374 = dma.done.wait [#allocation9], 512  }
  0x11   :  { %375 = vsyncadd [#allocation9], 4294966784  ;;  %v380_v0 = vmov 0   ;;  %vm172_vm0 = vcmask 35840   ;;  %v171_v1 = vld [vmem:[%s461_s4] sm:$0xf]  ;;  %v185_v49 = vlaneseq }
  0x12   :  { %265 = vset.pattern.permute.xlu0 %v380_v0  ;;  %266 = vset.pattern.permute.xlu2 %v380_v0  ;;  %v173_v2 = vsel %vm172_vm0, %v171_v1, -inf  ;;  %v187_v3 = vld [vmem:[%s462_s5] sm:$0xf]  ;;  %v108_v5 = vld [vmem:[#allocation7 + $0x8] sm:$0xff]  ;;  %v109_v11 = vld [vmem:[#allocation7 + $0x10] sm:$0xff]  ;;  %vm211_vm2 = vcmask 28672  }
  0x13   :  { %174 = vmax.xlane.f32.xlu0 %v173_v2  ;;  %v107_v4 = vld [vmem:[#allocation7] sm:$0xff]  ;;  %v112_v7 = vld [vmem:[#allocation3 + $0x8] sm:$0xff]  ;;  %v113_v12 = vld [vmem:[#allocation3 + $0x10] sm:$0xff]  ;;  %v442_v52 = vand.u32 127, %v185_v49  ;;  %vm105_vm3 = vcmask 0   ;;  %v381_v61 = vmov 0.0  }
  0x14   :  { %v111_v6 = vld [vmem:[#allocation3] sm:$0xff]  ;;  %v128_v9 = vld [vmem:[#allocation5 + $0x8] sm:$0xff]  ;;  %v116_v13 = vsub.f32 %v112_v7, %v108_v5  ;;  %v129_v16 = vld [vmem:[#allocation5 + $0x10] sm:$0xff]  ;;  %v117_v19 = vsub.f32 %v113_v12, %v109_v11  ;;  %106 = vst.msk [vmem:[#allocation2] sm:$0x1] %vm105_vm3, %v381_v61  ;;  %vm197_vm4 = vcmask 3072  }
  0x15   :  { %v127_v8 = vld [vmem:[#allocation5] sm:$0xff]  ;;  %v115_v10 = vsub.f32 %v111_v6, %v107_v4  ;;  %v132_v15 = vsub.f32 %v128_v9, %v108_v5  ;;  %v110_v17 = vld [vmem:[#allocation7 + $0x18] sm:$0xff]  ;;  %v133_v23 = vsub.f32 %v129_v16, %v109_v11  ;;  %v145_v35 = vld [vmem:[#allocation8 + $0x8] sm:$0xff]  ;;  %vm225_vm5 = vcmp.eq.s32.totalorder %v442_v52, 0 }
  0x16   :  { %v131_v14 = vsub.f32 %v127_v8, %v107_v4  ;;  %v114_v18 = vld [vmem:[#allocation3 + $0x18] sm:$0xff]  ;;  %v120_v22 = vand.u32 2147483647, %v116_v13  ;;  %v121_v28 = vand.u32 2147483647, %v117_v19  ;;  %v144_v34 = vld [vmem:[#allocation8] sm:$0xff] }
  0x17   :  { %v119_v20 = vand.u32 2147483647, %v115_v10  ;;  %v130_v21 = vld [vmem:[#allocation5 + $0x18] sm:$0xff]  ;;  %v136_v25 = vand.u32 2147483647, %v132_v15  ;;  %v118_v27 = vsub.f32 %v114_v18, %v110_v17  ;;  %v146_v42 = vld [vmem:[#allocation8 + $0x10] sm:$0xff] }
  0x18   :  { %v135_v24 = vand.u32 2147483647, %v131_v14  ;;  %v134_v29 = vsub.f32 %v130_v21, %v110_v17  ;;  %v137_v31 = vand.u32 2147483647, %v133_v23  ;;  %v147_v46 = vld [vmem:[#allocation8 + $0x18] sm:$0xff]  ;;  %vm234_vm6 = vcmp.eq.s32.totalorder %v442_v52, 1 }
  0x19   :  { %v140_v33 = vadd.f32 %v136_v25, %v120_v22  ;;  %v122_v37 = vand.u32 2147483647, %v118_v27  ;;  %v208_v57 = vld [vmem:[%s463_s6] sm:$0x1f]  ;;  %vm239_vm7 = vcmp.eq.s32.totalorder %v442_v52, 2  ;;  %vm244_vm8 = vcmask 31744  }
  0x1a   :  { %v139_v32 = vadd.f32 %v135_v24, %v119_v20  ;;  %v138_v38 = vand.u32 2147483647, %v134_v29  ;;  %v141_v39 = vadd.f32 %v137_v31, %v121_v28 }
  0x1b   :  { %v149_v41 = vmul.f32 %v145_v35, %v140_v33  ;;  %v143_v12 = vld [vmem:[#allocation2] sm:$0x1] }
  0x1c   :  { %v148_v40 = vmul.f32 %v144_v34, %v139_v32  ;;  %v142_v43 = vadd.f32 %v138_v38, %v122_v37  ;;  %v150_v44 = vmul.f32 %v146_v42, %v141_v39 }
  0x1e   :  { %v152_v45 = vadd.f32 %v149_v41, %v148_v40  ;;  %v151_v50 = vmul.f32 %v147_v46, %v142_v43 }
  0x20   :  { %v153_v51 = vadd.f32 %v152_v45, %v150_v44 }
  0x22   :  { %v154_v53 = vadd.f32 %v153_v51, %v151_v50 }
  0x27   :  { %189 = vperm.xlu0 %265, %v187_v3  }
  0x86   :  { %v175_v26 = vpop.xlane.xlu0 %174 }
  0x87   :  { %v176_v30 = vsub.f32 %v171_v1, %v175_v26 }
  0x89   :  { %v177_v36 = vmul.f32 1.442695, %v176_v30 }
  0x8b   :  { %268 = vpow2.f32 %v177_v36 }
  0x8c   :  { %270 = vlog2.f32 %v208_v57 }
  0x91   :  { %v269_v47 = vpop.eup %268 }
  0x92   :  { %v179_v48 = vsel %vm172_vm0, %v269_v47, 0.0  ;;  %v271_v58 = vpop.eup %270 }
  0x93   :  { %180 = vadd.xlane.f32.xlu1 %v179_v48  ;;  %v210_v59 = vmul.f32 0.6931472, %v271_v58 }
  0x95   :  { %v212_v60 = vsel %vm211_vm2, %v210_v59, 0.0 }
  0x99   :  { %v190_v54 = vpop.permute.xlu0 %189 }
  0x9a   :  { %vm191_vm1 = vcmp.eq.s32.totalorder %v442_v52, %v190_v54 }
  0x9b   :  { %v192_v55 = vsel %vm191_vm1, %v171_v1, 0.0  ;;  %155 = vadd.xlane.f32.xlu1 %v154_v53 }
  0x9c   :  { %v193_v56 = vsel %vm172_vm0, %v192_v55, 0.0 }
  0x9d   :  { %194 = vadd.xlane.f32.xlu2 %v193_v56 }
  0xa3   :  { %213 = vadd.xlane.f32.xlu1 %v212_v60 }
 0x106   :  { %v181_v62 = vpop.xlane.xlu1 %180 }
 0x107   :  { %272 = vlog2.f32 %v181_v62 }
 0x10d   :  { %v273_v63 = vpop.eup %272 }
 0x10e   :  { %v183_v0 = vmul.f32 0.6931472, %v273_v63  ;;  %v156_v1 = vpop.xlane.xlu1 %155 }
 0x10f   :  { %v157_v2 = vrot.slane %v156_v1, 4 }
 0x110   :  { %v184_v3 = vadd.f32 %v183_v0, %v175_v26  ;;  %v195_v4 = vpop.xlane.xlu2 %194 }
 0x111   :  { %v158_v5 = vadd.f32 %v157_v2, %v156_v1 }
 0x112   :  { %v196_v6 = vsub.f32 %v184_v3, %v195_v4 }
 0x113   :  { %v159_v7 = vrot.slane %v158_v5, 2 }
 0x114   :  { %v198_v8 = vsel %vm197_vm4, %v196_v6, 0.0 }
 0x115   :  { %199 = vadd.xlane.f32.xlu2 %v198_v8  ;;  %v160_v9 = vadd.f32 %v159_v7, %v158_v5 }
 0x116   :  { %v214_v16 = vpop.xlane.xlu1 %213 }
 0x117   :  { %v161_v10 = vrot.slane %v160_v9, 1  ;;  %v215_v17 = vrot.slane %v214_v16, 4 }
 0x119   :  { %v162_v11 = vadd.f32 %v161_v10, %v160_v9  ;;  %v216_v18 = vadd.f32 %v215_v17, %v214_v16 }
 0x11b   :  { %253 = vpush %v162_v11  ;;  %v217_v19 = vrot.slane %v216_v18, 2 }
 0x11d   :  { %v218_v23 = vadd.f32 %v217_v19, %v216_v18 }
 0x11f   :  { %v219_v26 = vrot.slane %v218_v23, 1 }
 0x121   :  { %v220_v29 = vadd.f32 %v219_v26, %v218_v23 }
 0x14c   :  { %s254_s6 = spop %253 }
 0x14d   :  { %v164_v13 = vstv %s254_s6 }
 0x14e   :  { %v165_v14 = vadd.f32 %v164_v13, %v143_v12 }
 0x150   :  { %167 = vst.msk [vmem:[#allocation2] sm:$0x1] %vm105_vm3, %v165_v14 }
 0x157   :  { %v267_v15 = vld [vmem:[#allocation2] ss:$0 sm:$0xff] }
 0x158   :  { %230 = vperm.xlu2 %266, %v267_v15  }
 0x188   :  { %v200_v20 = vpop.xlane.xlu2 %199 }
 0x189   :  { %v201_v21 = vrot.slane %v200_v20, 4 }
 0x18b   :  { %v202_v22 = vadd.f32 %v201_v21, %v200_v20 }
 0x18d   :  { %v203_v24 = vrot.slane %v202_v22, 2 }
 0x18f   :  { %v204_v25 = vadd.f32 %v203_v24, %v202_v22 }
 0x191   :  { %v205_v27 = vrot.slane %v204_v25, 1 }
 0x193   :  { %v206_v28 = vadd.f32 %v205_v27, %v204_v25 }
 0x195   :  { %255 = vpush %v206_v28 }
 0x196   :  { %257 = vpush %v220_v29 }
 0x1b2   :  { %v231_v30 = vpop.permute.xlu2 %230 }
 0x1b3   :  { %v233_v32 = vsel %vm225_vm5, %v231_v30, 0.0 }
 0x1c6   :  { %s256_s21 = spop %255 }
 0x1c7   :  { %v236_v31 = vstv %s256_s21  ;;  %s258_s22 = spop %257 }
 0x1c8   :  { %v237_v33 = vsel %vm234_vm6, %v236_v31, 0.0  ;;  %v241_v34 = vstv %s258_s22 }
 0x1c9   :  { %v238_v35 = vadd.f32 %v237_v33, %v233_v32  ;;  %v242_v36 = vsel %vm239_vm7, %v241_v34, 0.0 }
 0x1cb   :  { %v243_v37 = vadd.f32 %v242_v36, %v238_v35 }
 0x1cd   :  { %245 = vst.msk [vmem:[%s464_s7] sm:$0xff] %vm244_vm8, %v243_v37 }
 0x1ce   :  { %250 = vsyncpa [#allocation4], 1 }
 0x1cf   :  { %251 = vsyncpa [#allocation6], 1 }
 0x1d0   :  { %252 = vsyncpa [#allocation9], 1 }

</bundles_post_ra>
